<compile_context>
chip_gen: v7x
topology: tpu7x:2x2x1
jax: 0.10.0
libtpu: 0.0.40
codegen_flags: <defaults>
</compile_context>

<pallas_src>
import functools

import jax
import jax.numpy as jnp
import numpy as np
from jax.experimental import pallas as pl
from jax.experimental.pallas import tpu as pltpu


# ----------------------------- helpers ------------------------------------- #

def _round_up(x, m):
    return ((x + m - 1) // m) * m


def _choose_tiles(B, L, itemsize):
    """Pick tiles first, then pad arrays up to tile multiples.

    Prefers full-row tiles (one contiguous DMA per row-tile) and caps the f32
    working tile at ~2 MiB so double-buffered inputs + temporaries stay well
    inside v7x's 64 MiB VMEM (and the 32 MiB scoped default)."""
    sub = 8 if itemsize >= 4 else (16 if itemsize == 2 else 32)
    tl = min(_round_up(L, 128), 2048)
    max_f32_tile_elems = (2 * 1024 * 1024) // 4
    tb_cap = max(sub, (max_f32_tile_elems // tl) // sub * sub)
    tb = min(_round_up(B, sub), 512, tb_cap)
    return tb, tl, _round_up(B, tb), _round_up(L, tl)


def _lane_chunk_sum(per, tl):
    """Reduce (tb, tl) -> (tb, 128) by summing 128-wide lane chunks (VPU adds,
    no relayout; static unrolled loop)."""
    partial = per[:, 0:128]
    for c in range(1, tl // 128):
        partial = partial + per[:, c * 128:(c + 1) * 128]
    return partial


def _one_hot_from_inds(inds, col_ids, tb, tl, K):
    """Synthesize the one-hot targets tile from compact indices in-register."""
    tgt = jnp.zeros((tb, tl), dtype=jnp.bool_)
    for k in range(K):
        tgt = tgt | (inds[:, k:k + 1] == col_ids)
    return tgt.astype(jnp.float32)


# --------------------- standalone BCE kernel (any model) ------------------- #

def _bce_kernel(x_ref, ind_ref, o_ref, *, K, tb, tl, with_logits):
    j = pl.program_id(1)

    @pl.when(j == 0)
    def _init():
        o_ref[...] = jnp.zeros_like(o_ref)

    x = x_ref[...].astype(jnp.float32)                       # (tb, tl) f32
    col_ids = j * tl + jax.lax.broadcasted_iota(jnp.int32, (tb, tl), 1)
    t = _one_hot_from_inds(ind_ref[...], col_ids, tb, tl, K)

    if with_logits:
        # torch.nn.BCEWithLogitsLoss stable form.  Padded elements are -1e9
        # with t == 0 -> contribute exactly 0.
        per = jnp.maximum(x, 0.0) - x * t + jnp.log1p(jnp.exp(-jnp.abs(x)))
    else:
        # torch.nn.BCELoss with the -100 clamp.  Padded elements are 0.0 with
        # t == 0 -> contribute exactly 0.
        log_p = jnp.maximum(jnp.log(x), -100.0)
        log_1mp = jnp.maximum(jnp.log1p(-x), -100.0)
        per = -(t * log_p + (1.0 - t) * log_1mp)

    o_ref[...] += _lane_chunk_sum(per, tl)


def pallas_bce_from_inds(out, compact_inds, *, with_logits=True,
                         reduction="mean"):
    """BCE over `out` (B, L); targets are the one-hot of `compact_inds`
    (B, K int32; -1 = no label), built inside the kernel."""
    if reduction not in ("mean", "sum"):
        # TODO(synk): 'none' reduction would need a (B, L) output.
        raise NotImplementedError(reduction)

    B, L = out.shape
    K = compact_inds.shape[1]
    itemsize = jnp.dtype(out.dtype).itemsize
    tb, tl, B_pad, L_pad = _choose_tiles(B, L, itemsize)

    pad_val = -1e9 if with_logits else 0.0       # exact-zero loss contribution
    if (B_pad, L_pad) != (B, L):
        out = jnp.pad(out, ((0, B_pad - B), (0, L_pad - L)),
                      constant_values=pad_val)
    compact_inds = compact_inds.astype(jnp.int32)
    if B_pad != B:
        compact_inds = jnp.pad(compact_inds, ((0, B_pad - B), (0, 0)),
                               constant_values=-1)

    kernel = functools.partial(_bce_kernel, K=K, tb=tb, tl=tl,
                               with_logits=with_logits)
    grid = (B_pad // tb, L_pad // tl)
    partials = pl.pallas_call(
        kernel,
        grid=grid,
        in_specs=[
            pl.BlockSpec((tb, tl), lambda i, j: (i, j)),    # logits / probs
            pl.BlockSpec((tb, K), lambda i, j: (i, 0)),     # compact label ids
        ],
        out_specs=pl.BlockSpec((tb, 128), lambda i, j: (i, 0)),
        out_shape=jax.ShapeDtypeStruct((B_pad, 128), jnp.float32),
        compiler_params=pltpu.CompilerParams(
            dimension_semantics=("parallel", "arbitrary")),
        cost_estimate=pl.CostEstimate(
            flops=8 * B_pad * L_pad,
            transcendentals=2 * B_pad * L_pad,
            bytes_accessed=B_pad * L_pad * itemsize
                           + B_pad * (K * 4 + 128 * 4)),
    )(out, compact_inds)

    total = jnp.sum(partials)
    denom = float(B * L) if reduction == "mean" else 1.0
    return total / denom


# --------------- fused linear-scorer + BCEWithLogits kernel ---------------- #

def _fused_linear_bce_kernel(x_ref, w_ref, b_ref, ind_ref, o_ref, *,
                             B, K, tb, tl, need_row_mask):
    i = pl.program_id(0)
    j = pl.program_id(1)

    @pl.when(j == 0)
    def _init():
        o_ref[...] = jnp.zeros_like(o_ref)

    # (tb, D) x (tl, D) contracted over D on the MXU -> (tb, tl) f32 logits.
    logits = jax.lax.dot_general(
        x_ref[...], w_ref[...], (((1,), (1,)), ((), ())),
        preferred_element_type=jnp.float32)
    logits = logits + b_ref[...].astype(jnp.float32)   # bias (1, tl) broadcast

    col_ids = j * tl + jax.lax.broadcasted_iota(jnp.int32, (tb, tl), 1)
    t = _one_hot_from_inds(ind_ref[...], col_ids, tb, tl, K)

    # Padded columns carry bias = -1e9 (and zero W rows) -> logits = -1e9,
    # t = 0 -> exactly 0 loss.  Padded rows (zero x) need an explicit mask.
    per = (jnp.maximum(logits, 0.0) - logits * t
           + jnp.log1p(jnp.exp(-jnp.abs(logits))))
    if need_row_mask:
        row_ids = i * tb + jax.lax.broadcasted_iota(jnp.int32, (tb, tl), 0)
        per = jnp.where(row_ids < B, per, 0.0)

    o_ref[...] += _lane_chunk_sum(per, tl)


def pallas_fused_linear_bce(x, W, bias, valid_batch_y, compact_inds, *,
                            reduction="mean"):
    """Fused  BCEWithLogits( x @ W[valid_batch_y].T + b[valid_batch_y] , onehot ).

    The (B, L) logits never touch HBM; only the (L, D) gathered weight slab
    and (B, D) features stream into the kernel."""
    if reduction not in ("mean", "sum"):
        raise NotImplementedError(reduction)

    B, D = x.shape
    L = int(valid_batch_y.shape[0])
    K = compact_inds.shape[1]
    itemsize = jnp.dtype(x.dtype).itemsize
    tb, tl, B_pad, L_pad = _choose_tiles(B, L, itemsize)
    D_pad = _round_up(D, 128)

    Wv = W[valid_batch_y].astype(x.dtype)            # (L, D) gathered rows
    bv = bias[valid_batch_y].astype(jnp.float32)     # (L,)

    if (B_pad, D_pad) != (B, D):
        x = jnp.pad(x, ((0, B_pad - B), (0, D_pad - D)))
    if (L_pad, D_pad) != (L, D):
        Wv = jnp.pad(Wv, ((0, L_pad - L), (0, D_pad - D)))
    bv = jnp.pad(bv, (0, L_pad - L), constant_values=-1e9).reshape(1, L_pad)

    compact_inds = compact_inds.astype(jnp.int32)
    if B_pad != B:
        compact_inds = jnp.pad(compact_inds, ((0, B_pad - B), (0, 0)),
                               constant_values=-1)

    kernel = functools.partial(_fused_linear_bce_kernel, B=B, K=K, tb=tb,
                               tl=tl, need_row_mask=(B_pad != B))
    grid = (B_pad // tb, L_pad // tl)
    partials = pl.pallas_call(
        kernel,
        grid=grid,
        in_specs=[
            pl.BlockSpec((tb, D_pad), lambda i, j: (i, 0)),   # features
            pl.BlockSpec((tl, D_pad), lambda i, j: (j, 0)),   # gathered weights
            pl.BlockSpec((1, tl), lambda i, j: (0, j)),       # gathered bias
            pl.BlockSpec((tb, K), lambda i, j: (i, 0)),       # compact label ids
        ],
        out_specs=pl.BlockSpec((tb, 128), lambda i, j: (i, 0)),
        out_shape=jax.ShapeDtypeStruct((B_pad, 128), jnp.float32),
        compiler_params=pltpu.CompilerParams(
            dimension_semantics=("parallel", "arbitrary")),
        cost_estimate=pl.CostEstimate(
            flops=2 * B_pad * L_pad * D_pad + 8 * B_pad * L_pad,
            transcendentals=2 * B_pad * L_pad,
            bytes_accessed=(B_pad * D_pad + L_pad * D_pad) * itemsize
                           + B_pad * (K * 4 + 128 * 4)),
    )(x, Wv, bv, compact_inds)

    total = jnp.sum(partials)
    denom = float(B * L) if reduction == "mean" else 1.0
    return total / denom


# ------------------------------ JAX-side glue ------------------------------ #

def compact_label_inds(numy, inds):
    """unique / remap bookkeeping from BatchBCELoss.forward."""
    # TODO(synk): jnp.unique without `size=` and the Python bool() below are
    # eager-only (data-dependent shapes, as in the original module).
    batch_y = jnp.unique(inds)                               # sorted unique
    mask = jnp.zeros(numy + 1, dtype=jnp.int32)
    mask = mask.at[batch_y].set(jnp.arange(batch_y.shape[0], dtype=jnp.int32))
    batch_y_inds = mask[inds].astype(jnp.int32)              # (B, K) compact
    has_pad = bool(batch_y[-1] == numy)
    valid_batch_y = batch_y[:-1] if has_pad else batch_y
    # Entries pointing at the padding label map to sentinel -1: they can never
    # match any column (valid or padded) inside the kernel.
    batch_y_inds = jnp.where(inds == numy, jnp.int32(-1), batch_y_inds)
    return valid_batch_y, batch_y_inds


class BatchBCELossPallas:
    """JAX/Pallas port of BatchBCELoss."""

    def __init__(self, numy, loss_with_logits=True, reduction="mean"):
        self.numy = numy
        self.with_logits = loss_with_logits
        self.reduction = reduction

    def __call__(self, model, b):
        valid_batch_y, batch_y_inds = compact_label_inds(self.numy,
                                                         b["y"]["inds"])
        # Fused path for linear scorers: logits never round-trip HBM.
        if (self.with_logits and hasattr(model, "W") and hasattr(model, "b")
                and "x" in b):
            return pallas_fused_linear_bce(b["x"], model.W, model.b,
                                           valid_batch_y, batch_y_inds,
                                           reduction=self.reduction)
        # TODO(synk): arbitrary user models can't be fused in general; fall
        # back to precomputed (B, L) outputs + the standalone BCE kernel.
        out = model(b, valid_batch_y)
        return pallas_bce_from_inds(out, batch_y_inds,
                                    with_logits=self.with_logits,
                                    reduction=self.reduction)


class LinearModel:
    """Deterministic stand-in for the external `model(b, valid_batch_y)`."""

    def __init__(self, key, feat_dim, numy):
        k_w, k_b = jax.random.split(key)
        self.W = 0.1 * jax.random.normal(k_w, (numy, feat_dim), jnp.float32)
        self.b = 0.1 * jax.random.normal(k_b, (numy,), jnp.float32)

    def __call__(self, batch, valid_batch_y):
        x = batch["x"]                                       # (B, D)
        return x @ self.W[valid_batch_y].T + self.b[valid_batch_y]  # (B, L)


class OpaqueModel:
    """Wrapper hiding W/b so the generic (unfused) kernel path is exercised."""

    def __init__(self, inner):
        self._inner = inner

    def __call__(self, batch, valid_batch_y):
        return self._inner(batch, valid_batch_y)


# --------------------------- pure-JAX reference ---------------------------- #

def reference_loss(numy, model, b, *, with_logits=True):
    inds = b["y"]["inds"]
    batch_y = jnp.unique(inds)
    mask = jnp.zeros(numy + 1, dtype=jnp.int32)
    mask = mask.at[batch_y].set(jnp.arange(batch_y.shape[0], dtype=jnp.int32))
    batch_y_inds = mask[inds]
    has_pad = bool(batch_y[-1] == numy)
    valid_batch_y = batch_y[:-1] if has_pad else batch_y
    out = model(b, valid_batch_y).astype(jnp.float32)
    Bn = out.shape[0]
    targets = jnp.zeros((Bn, batch_y.shape[0]), jnp.float32)
    targets = targets.at[jnp.arange(Bn)[:, None], batch_y_inds].set(1.0)
    if has_pad:
        targets = targets[:, :-1]
    if with_logits:
        per = (jnp.maximum(out, 0.0) - out * targets
               + jnp.log1p(jnp.exp(-jnp.abs(out))))
    else:
        log_p = jnp.maximum(jnp.log(out), -100.0)
        log_1mp = jnp.maximum(jnp.log1p(-out), -100.0)
        per = -(targets * log_p + (1.0 - targets) * log_1mp)
    return jnp.mean(per)


# ---------------------------------- main ----------------------------------- #

if __name__ == "__main__":
    key = jax.random.PRNGKey(0)
    numy, feat_dim = 16, 32
    B, K = 8, 3

    k_w, k_x, k_y = jax.random.split(key, 3)
    model = LinearModel(k_w, feat_dim, numy)
    x = jax.random.normal(k_x, (B, feat_dim), jnp.float32)
    core_inds = jax.random.randint(k_y, (B, K), 0, numy, dtype=jnp.int32)
    # Append the padding label (== numy) to exercise the truncation branch.
    inds = jnp.concatenate(
        [core_inds, jnp.full((B, 1), numy, dtype=jnp.int32)], axis=1)
    b = {"x": x, "y": {"inds": inds}}

    # --- BCEWithLogitsLoss, fused linear-scorer kernel ---------------------- #
    crit = BatchBCELossPallas(numy=numy, loss_with_logits=True,
                              reduction="mean")
    loss = crit(model, b)
    jax.block_until_ready(loss)
    ref = reference_loss(numy, model, b, with_logits=True)
    assert np.isfinite(float(loss))
    assert np.allclose(float(loss), float(ref), rtol=1e-4, atol=1e-5), \
        (float(loss), float(ref))

    # --- BCEWithLogitsLoss, generic (unfused) kernel ------------------------ #
    loss_g = crit(OpaqueModel(model), b)
    jax.block_until_ready(loss_g)
    assert np.isfinite(float(loss_g))
    assert np.allclose(float(loss_g), float(ref), rtol=1e-5, atol=1e-6), \
        (float(loss_g), float(ref))

    # --- BCELoss (probabilities), generic kernel ---------------------------- #
    prob_model = lambda bb, vy: jax.nn.sigmoid(model(bb, vy))
    crit2 = BatchBCELossPallas(numy=numy, loss_with_logits=False,
                               reduction="mean")
    loss2 = crit2(prob_model, b)
    jax.block_until_ready(loss2)
    ref2 = reference_loss(numy, prob_model, b, with_logits=False)
    assert np.isfinite(float(loss2))
    assert np.allclose(float(loss2), float(ref2), rtol=1e-5, atol=1e-6), \
        (float(loss2), float(ref2))

    print("KERNEL_OK")
</pallas_src>

<mosaic_0001>
module attributes {stable_mosaic.version = 11 : i64} {
  func.func @_fused_linear_bce_kernel(%arg0: i32, %arg1: i32, %arg2: memref<8x128xf32, #tpu.memory_space<vmem>>, %arg3: memref<128x128xf32, #tpu.memory_space<vmem>>, %arg4: memref<1x128xf32, #tpu.memory_space<vmem>>, %arg5: memref<8x4xi32, #tpu.memory_space<vmem>>, %arg6: memref<8x128xf32, #tpu.memory_space<vmem>>) attributes {dimension_semantics = [#tpu.dimension_semantics<parallel>, #tpu.dimension_semantics<arbitrary>], iteration_bounds = array<i64: 1, 1>, scalar_prefetch = 0 : i64, scratch_operands = 0 : i64, tpu.core_type = #tpu.core_type<tc>, window_params = [{transform_indices = @transform_0, window_bounds = array<i64: 8, 128>}, {transform_indices = @transform_1, window_bounds = array<i64: 128, 128>}, {transform_indices = @transform_2, window_bounds = array<i64: 1, 128>}, {transform_indices = @transform_3, window_bounds = array<i64: 8, 4>}, {transform_indices = @transform_4, window_bounds = array<i64: 8, 128>}]} {
    %c0_i32 = arith.constant 0 : i32
    %0 = arith.cmpi eq, %arg1, %c0_i32 : i32
    %1 = arith.extui %0 : i1 to i32
    %c0_i32_0 = arith.constant 0 : i32
    %2 = arith.cmpi ne, %1, %c0_i32_0 : i32
    scf.if %2 {
      %cst_14 = arith.constant 0.000000e+00 : f32
      %46 = vector.broadcast %cst_14 : f32 to vector<8x128xf32>
      %c0_15 = arith.constant 0 : index
      %c0_16 = arith.constant 0 : index
      %47 = vector.load %arg6[%c0_15, %c0_16] : memref<8x128xf32, #tpu.memory_space<vmem>>, vector<8x128xf32>
      tpu.vector_store %arg6[%c0_15, %c0_16], %46 {strides = array<i32>} : memref<8x128xf32, #tpu.memory_space<vmem>>, vector<8x128xf32>,
    } else {
    }
    %c0 = arith.constant 0 : index
    %c0_1 = arith.constant 0 : index
    %3 = vector.load %arg2[%c0, %c0_1] : memref<8x128xf32, #tpu.memory_space<vmem>>, vector<8x128xf32>
    %c0_2 = arith.constant 0 : index
    %c0_3 = arith.constant 0 : index
    %4 = vector.load %arg3[%c0_2, %c0_3] : memref<128x128xf32, #tpu.memory_space<vmem>>, vector<128x128xf32>
    %cst = arith.constant dense<0.000000e+00> : vector<8x128xf32>
    %5 = tpu.matmul %3, %4, %cst {dimension_numbers = #tpu.dot_dimension_numbers<[1], [1], [0], [0], [0, 0, 1, 0], [], []>} : vector<8x128xf32>, vector<128x128xf32>, vector<8x128xf32> -> vector<8x128xf32>
    %c0_4 = arith.constant 0 : index
    %c0_5 = arith.constant 0 : index
    %6 = vector.load %arg4[%c0_4, %c0_5] : memref<1x128xf32, #tpu.memory_space<vmem>>, vector<1x128xf32>
    %7 = vector.broadcast %6 : vector<1x128xf32> to vector<8x128xf32>
    %8 = arith.addf %5, %7 : vector<8x128xf32>
    %c128_i32 = arith.constant 128 : i32
    %9 = arith.muli %arg1, %c128_i32 : i32
    %10 = tpu.iota {dimensions = array<i32: 1>} : vector<8x128xi32>
    %11 = vector.broadcast %9 : i32 to vector<8x128xi32>
    %12 = arith.addi %11, %10 : vector<8x128xi32>
    %c0_6 = arith.constant 0 : index
    %c0_7 = arith.constant 0 : index
    %13 = vector.load %arg5[%c0_6, %c0_7] : memref<8x4xi32, #tpu.memory_space<vmem>>, vector<8x4xi32>
    %false = arith.constant false
    %14 = vector.broadcast %false : i1 to vector<8x128xi1>
    %15 = vector.extract_strided_slice %13 {offsets = [0, 0], sizes = [8, 1], strides = [1, 1]} : vector<8x4xi32> to vector<8x1xi32>
    %16 = vector.broadcast %15 : vector<8x1xi32> to vector<8x128xi32>
    %17 = arith.cmpi eq, %16, %12 : vector<8x128xi32>
    %18 = arith.ori %14, %17 : vector<8x128xi1>
    %19 = vector.extract_strided_slice %13 {offsets = [0, 1], sizes = [8, 1], strides = [1, 1]} : vector<8x4xi32> to vector<8x1xi32>
    %20 = vector.broadcast %19 : vector<8x1xi32> to vector<8x128xi32>
    %21 = arith.cmpi eq, %20, %12 : vector<8x128xi32>
    %22 = arith.ori %18, %21 : vector<8x128xi1>
    %23 = vector.extract_strided_slice %13 {offsets = [0, 2], sizes = [8, 1], strides = [1, 1]} : vector<8x4xi32> to vector<8x1xi32>
    %24 = vector.broadcast %23 : vector<8x1xi32> to vector<8x128xi32>
    %25 = arith.cmpi eq, %24, %12 : vector<8x128xi32>
    %26 = arith.ori %22, %25 : vector<8x128xi1>
    %27 = vector.extract_strided_slice %13 {offsets = [0, 3], sizes = [8, 1], strides = [1, 1]} : vector<8x4xi32> to vector<8x1xi32>
    %28 = vector.broadcast %27 : vector<8x1xi32> to vector<8x128xi32>
    %29 = arith.cmpi eq, %28, %12 : vector<8x128xi32>
    %30 = arith.ori %26, %29 : vector<8x128xi1>
    %31 = arith.extui %30 : vector<8x128xi1> to vector<8x128xi32>
    %32 = arith.sitofp %31 : vector<8x128xi32> to vector<8x128xf32>
    %cst_8 = arith.constant 0.000000e+00 : f32
    %33 = vector.broadcast %cst_8 : f32 to vector<8x128xf32>
    %34 = arith.maximumf %8, %33 : vector<8x128xf32>
    %35 = arith.mulf %8, %32 : vector<8x128xf32>
    %36 = arith.subf %34, %35 : vector<8x128xf32>
    %37 = math.absf %8 : vector<8x128xf32>
    %cst_9 = arith.constant 0.000000e+00 : f32
    %38 = vector.broadcast %cst_9 : f32 to vector<8x128xf32>
    %39 = arith.subf %38, %37 : vector<8x128xf32>
    %40 = math.exp %39 : vector<8x128xf32>
    %41 = math.log1p %40 : vector<8x128xf32>
    %42 = arith.addf %36, %41 : vector<8x128xf32>
    %c0_10 = arith.constant 0 : index
    %c0_11 = arith.constant 0 : index
    %43 = vector.load %arg6[%c0_10, %c0_11] : memref<8x128xf32, #tpu.memory_space<vmem>>, vector<8x128xf32>
    %44 = arith.addf %43, %42 : vector<8x128xf32>
    %c0_12 = arith.constant 0 : index
    %c0_13 = arith.constant 0 : index
    %45 = vector.load %arg6[%c0_12, %c0_13] : memref<8x128xf32, #tpu.memory_space<vmem>>, vector<8x128xf32>
    tpu.vector_store %arg6[%c0_12, %c0_13], %44 {strides = array<i32>} : memref<8x128xf32, #tpu.memory_space<vmem>>, vector<8x128xf32>,
    return
  }
  func.func @transform_0(%arg0: i32, %arg1: i32) -> (i32, i32) {
    %c0_i32 = arith.constant 0 : i32
    %c0_i32_0 = arith.constant 0 : i32
    return %arg0, %c0_i32 : i32, i32
  }
  func.func @transform_1(%arg0: i32, %arg1: i32) -> (i32, i32) {
    %c0_i32 = arith.constant 0 : i32
    %c0_i32_0 = arith.constant 0 : i32
    return %arg1, %c0_i32 : i32, i32
  }
  func.func @transform_2(%arg0: i32, %arg1: i32) -> (i32, i32) {
    %c0_i32 = arith.constant 0 : i32
    %c0_i32_0 = arith.constant 0 : i32
    return %c0_i32, %arg1 : i32, i32
  }
  func.func @transform_3(%arg0: i32, %arg1: i32) -> (i32, i32) {
    %c0_i32 = arith.constant 0 : i32
    %c0_i32_0 = arith.constant 0 : i32
    return %arg0, %c0_i32 : i32, i32
  }
  func.func @transform_4(%arg0: i32, %arg1: i32) -> (i32, i32) {
    %c0_i32 = arith.constant 0 : i32
    %c0_i32_0 = arith.constant 0 : i32
    return %arg0, %c0_i32 : i32, i32
  }
}

</mosaic_0001>

<bundles_post_ra>
// kernel: tpu_custom_call.1
= control target key start
LH: loop header
LB: loop body
LE: loop exit
PB: predicated region body
PF: predicated region fallthrough
CT: control target
= control target key end

     0   :  { %9 = vsyncpa [#allocation3], 0  ;;  %s410_s0 = inlined_call_operand.vmem [shape: f32[8,128], index: 0, kind: input, shape index: {}]   ;;  %s411_s1 = inlined_call_operand.hbm [shape: f32[128,128], index: 1, kind: input, shape index: {}]   ;;  %s412_s2 = inlined_call_operand.vmem [shape: f32[1,128], index: 2, kind: input, shape index: {}]   ;;  %s413_s3 = inlined_call_operand.vmem [shape: s32[8,4], index: 3, kind: input, shape index: {}]   ;;  %s414_s4 = inlined_call_operand.hbm [shape: f32[8,128], index: 4, kind: output, shape index: {}]  }
   0x1   :  { %10 = vsyncpa [#allocation4], 0  ;;  %s339_s15 = smov [#allocation2]   ;;  %s291_s19 = scalar_lea.hbm %s411_s1, 2048 }
   0x2   :  { %s18_s16 = sshll.u32 %s339_s15, 4  ;;  %p292_p0 = scmp.ne.s32.totalorder %s411_s1, %s291_s19  ;;  %s19_s16 = int_to_ptr.vmem [resolvable:$true] %s18_s16 }
   0x3   :  { %p295_p1 = scmp.lt.u32.totalorder %s291_s19, %s411_s1 }
   0x5   :  { %p297_p2 = pnand %p295_p1, %p292_p0 }
   0x7   :  { %300 = shalt.err (!%p297_p2)
}
   0x8   :  { %s301_s24 = scalar_lea.vmem %s19_s16, 2048  ;;  %p306_p4 = scmp.lt.s32.totalorder %s19_s16, %s19_s16 }
   0x9   :  { %p302_p3 = scmp.ne.s32.totalorder %s19_s16, %s301_s24  ;;  %p307_p5 = scmp.lt.s32.totalorder %s301_s24, %s301_s24 }
   0xb   :  { %p308_p6 = por %p307_p5, %p306_p4 }
   0xd   :  { %p309_p7 = pnand %p308_p6, %p302_p3 }
   0xf   :  { %312 = shalt.err (!%p309_p7)
}
  0x10   :  { %s340_s25 = smov 128   ;;  %s341_s26 = smov 8  }
  0x11   :  { %24 = dma.hbm_to_vmem [thread:$0]  %s411_s1, 2048, %s19_s16, [#allocation3], %s340_s25, %s340_s25, %s341_s26  }
  0x12   :  { %335 = dma.done.wait [#allocation3], 2048  }
  0x13   :  { %336 = vsyncadd [#allocation3], 4294965248  ;;  %v342_v0 = vmov 0.0|0.0   ;;  %vm343_vm0 = vmmov 0   ;;  %v344_v1 = vmov 0.0   ;;  %v345_v2 = vmov 0  }
  0x14   :  { %247 = vmatprep.subr.bf16.mxu0 %v342_v0  ;;  %244 = vmatprep.mubr.msk.f32.mxu0 %vm343_vm0, %v344_v1  ;;  %v346_v3 = vmov 2   ;;  %v38_v4 = vld [vmem:[#allocation2] sm:$0xff]  ;;  %v39_v5 = vld [vmem:[#allocation2 + $0x8] sm:$0xff]  ;;  %v40_v7 = vld [vmem:[#allocation2 + $0x10] sm:$0xff]  ;;  %v347_v11 = vmov 1   ;;  %v348_v12 = vmov 3   ;;  %v132_v39 = vlaneseq }
  0x15   :  { %282 = vset.pattern.permute.xlu0 %v345_v2  ;;  %284 = vset.pattern.permute.xlu1 %v346_v3  ;;  %v248_v6 = vpack.c.bf16 %v39_v5, %v38_v4  ;;  %v41_v8 = vld [vmem:[#allocation2 + $0x18] sm:$0xff]  ;;  %v136_v9 = vld [vmem:[%s413_s3] sm:$0xff]  ;;  %v43_v14 = vld [vmem:[#allocation2 + $0x28] sm:$0xff] }
  0x16   :  { %138 = vperm.xlu0 %282, %v136_v9   ;;  %147 = vperm.xlu1 %284, %v136_v9   ;;  %v251_v10 = vpack.c.bf16 %v41_v8, %v40_v7  ;;  %v42_v13 = vld [vmem:[#allocation2 + $0x20] sm:$0xff]  ;;  %v44_v16 = vld [vmem:[#allocation2 + $0x30] sm:$0xff]  ;;  %v45_v17 = vld [vmem:[#allocation2 + $0x38] sm:$0xff]  ;;  %v133_v41 = vand.u32 127, %v132_v39 }
  0x17   :  { %249 = vmatpush3.bf16.xpose.msra.mxu0 %v248_v6  ;;  %v254_v15 = vpack.c.bf16 %v43_v14, %v42_v13  ;;  %v257_v18 = vpack.c.bf16 %v45_v17, %v44_v16  ;;  %v46_v19 = vld [vmem:[#allocation2 + $0x40] sm:$0xff]  ;;  %v47_v20 = vld [vmem:[#allocation2 + $0x48] sm:$0xff]  ;;  %v48_v22 = vld [vmem:[#allocation2 + $0x50] sm:$0xff] }
  0x18   :  { %250 = vmatprep.subr.bf16.mxu0 %v342_v0  ;;  %v260_v21 = vpack.c.bf16 %v47_v20, %v46_v19  ;;  %v49_v23 = vld [vmem:[#allocation2 + $0x58] sm:$0xff]  ;;  %v50_v25 = vld [vmem:[#allocation2 + $0x60] sm:$0xff]  ;;  %v51_v26 = vld [vmem:[#allocation2 + $0x68] sm:$0xff] }
  0x19   :  { %v263_v24 = vpack.c.bf16 %v49_v23, %v48_v22  ;;  %v266_v27 = vpack.c.bf16 %v51_v26, %v50_v25  ;;  %v52_v28 = vld [vmem:[#allocation2 + $0x70] sm:$0xff]  ;;  %v53_v29 = vld [vmem:[#allocation2 + $0x78] sm:$0xff]  ;;  %v37_v31 = vld [vmem:[%s410_s0] sm:$0xff]  ;;  %s349_s0 = smov [#allocation5]  }
  0x1a   :  { %283 = vset.pattern.permute.xlu0 %v347_v11  ;;  %285 = vset.pattern.permute.xlu1 %v348_v12  ;;  %v269_v30 = vpack.c.bf16 %v53_v29, %v52_v28  ;;  %v193_v32 = vld [vmem:[%s412_s2] ss:$0 sm:$0xff]  ;;  %s184_s2 = sshll.u32 %s349_s0, 4  ;;  %s185_s2 = int_to_ptr.vmem [resolvable:$true] %s184_s2 }
  0x1b   :  { %142 = vperm.xlu0 %283, %v136_v9   ;;  %152 = vperm.xlu1 %285, %v136_v9   ;;  %s313_s7 = scalar_lea.vmem %s185_s2, 128  ;;  %p318_p9 = scmp.lt.s32.totalorder %s185_s2, %s185_s2 }
  0x1c   :  { %p314_p8 = scmp.ne.s32.totalorder %s185_s2, %s313_s7  ;;  %p319_p10 = scmp.lt.s32.totalorder %s313_s7, %s313_s7 }
  0x1e   :  { %p320_p11 = por %p319_p10, %p318_p9 }
  0x1f   :  { %252 = vmatpush3.bf16.xpose.msra.mxu0 %v251_v10  ;;  %286 = vset.pattern.permute.xlu0 %v348_v12 }
  0x20   :  { %253 = vmatprep.subr.bf16.mxu0 %v342_v0  ;;  %p321_p12 = pnand %p320_p11, %p314_p8 }
  0x27   :  { %255 = vmatpush3.bf16.xpose.msra.mxu0 %v254_v15 }
  0x28   :  { %256 = vmatprep.subr.bf16.mxu0 %v342_v0 }
  0x2f   :  { %258 = vmatpush3.bf16.xpose.msra.mxu0 %v257_v18 }
  0x30   :  { %259 = vmatprep.subr.bf16.mxu0 %v342_v0 }
  0x37   :  { %261 = vmatpush3.bf16.xpose.msra.mxu0 %v260_v21 }
  0x38   :  { %262 = vmatprep.subr.bf16.mxu0 %v342_v0 }
  0x3f   :  { %264 = vmatpush3.bf16.xpose.msra.mxu0 %v263_v24 }
  0x40   :  { %265 = vmatprep.subr.bf16.mxu0 %v342_v0 }
  0x47   :  { %267 = vmatpush3.bf16.xpose.msra.mxu0 %v266_v27 }
  0x48   :  { %268 = vmatprep.subr.bf16.mxu0 %v342_v0 }
  0x4f   :  { %270 = vmatpush3.bf16.xpose.msra.mxu0 %v269_v30 }
  0x56   :  { %245 = vmatmul.mubr.f32.vlgmr.msra.gmra.mrb[0].mxu0 %v37_v31 }
  0x95   :  { %v139_v38 = vpop.permute.xlu0 %138  ;;  %v148_v42 = vpop.permute.xlu1 %147 }
  0x96   :  { %vm140_vm1 = vcmp.eq.s32.totalorder %v139_v38, %v133_v41  ;;  %vm149_vm3 = vcmp.eq.s32.totalorder %v148_v42, %v133_v41 }
  0x9a   :  { %v143_v43 = vpop.permute.xlu0 %142  ;;  %v153_v44 = vpop.permute.xlu1 %152 }
  0x9b   :  { %vm144_vm2 = vcmp.eq.s32.totalorder %v143_v43, %v133_v41  ;;  %vm154_vm6 = vcmp.eq.s32.totalorder %v153_v44, %v133_v41 }
  0x9c   :  { %vm145_vm4 = vmor %vm140_vm1, %vm144_vm2 }
  0x9d   :  { %vm150_vm5 = vmor %vm145_vm4, %vm149_vm3 }
  0x9e   :  { %vm155_vm7 = vmor %vm150_vm5, %vm154_vm6 }
  0x9f   :  { %v194_v48 = vsel %vm155_vm7, 1.0, %v344_v1 }
 0x129   :  { %v127_v33 = vpop.f32.mrb[0].mxu0 }
 0x12a   :  { %v128_v34 = vadd.f32 %v193_v32, %v127_v33  ;;  %v246_v35 = vpop.f32.mrb[1].mxu0 }
 0x12c   :  { %v161_v36 = vand.u32 2147483647, %v128_v34  ;;  %v158_v50 = vmax.f32 %v128_v34, 0.0  ;;  %v159_v51 = vmul.f32 %v194_v48, %v128_v34 }
 0x12e   :  { %v162_v37 = vsub.f32 0.0, %v161_v36  ;;  %v160_v56 = vsub.f32 %v158_v50, %v159_v51 }
 0x130   :  { %v163_v40 = vmul.f32 1.442695, %v162_v37 }
 0x132   :  { %287 = vpow2.f32 %v163_v40 }
 0x13c   :  { %v288_v45 = vpop.eup %287 }
 0x13d   :  { %v165_v46 = vadd.f32 1.0, %v288_v45  ;;  %v168_v47 = vmul.f32 -0.5, %v288_v45  ;;  %v171_v52 = vand.u32 2147483647, %v288_v45 }
 0x13f   :  { %289 = vlog2.f32 %v165_v46  ;;  %v169_v49 = vadd.f32 1.0, %v168_v47  ;;  %vm172_vm8 = vcmp.lt.f32.partialorder %v171_v52, 0.0004427343 }
 0x141   :  { %v170_v55 = vmul.f32 %v288_v45, %v169_v49 }
 0x149   :  { %v290_v53 = vpop.eup %289 }
 0x14a   :  { %v167_v54 = vmul.f32 0.6931472, %v290_v53 }
 0x14c   :  { %v173_v57 = vsel %vm172_vm8, %v170_v55, %v167_v54 }
 0x14d   :  { %v174_v58 = vadd.f32 %v173_v57, %v160_v56 }
 0x14f   :  { %177 = vst [vmem:[#allocation5] sm:$0xff] %v174_v58 }
 0x150   :  { %324 = shalt.err (!%p321_p12)
}
 0x151   :  { %s325_s10 = scalar_lea.hbm %s414_s4, 128 }
 0x152   :  { %p326_p13 = scmp.ne.s32.totalorder %s414_s4, %s325_s10  ;;  %p329_p0 = scmp.lt.u32.totalorder %s325_s10, %s414_s4 }
 0x154   :  { %p331_p1 = pnand %p329_p0, %p326_p13 }
 0x156   :  { %334 = shalt.err (!%p331_p1)
}
 0x157   :  { %187 = dma.vmem_to_hbm [thread:$0]  %s185_s2, 128, %s414_s4, [#allocation4]  }
 0x158   :  { %337 = dma.done.wait [#allocation4], 128  }
 0x159   :  { %338 = vsyncadd [#allocation4], 4294967168 }
 0x15a   :  { %191 = vsyncpa [#allocation3], 1 }
 0x15b   :  { %192 = vsyncpa [#allocation4], 1 }

</bundles_post_ra>
